<compile_context>
chip_gen: v7x
topology: tpu7x:2x2x1
jax: 0.10.0
libtpu: 0.0.40
codegen_flags: <defaults>
</compile_context>

<pallas_src>
import jax
import jax.numpy as jnp
from jax.experimental import pallas as pl
from jax.experimental.pallas import tpu as pltpu


def make_mbconv_kernel(W, TH, HP, dw_dtype):
    """Fused MBConv kernel for one (batch, row-strip) grid point.

    W: image width; TH: interior rows per strip; HP: lane-padded length of the
    halo'd strip (TH+2 rows, padded to a multiple of 128); dw_dtype: dtype of
    the depthwise (VPU) stage.
    """
    TW = TH * W  # interior lanes per strip (multiple of 128, or == H*W)

    def kernel(x_ref, w1t_ref, b1_ref, rm_ref, wd_ref, b2_ref, cm_ref,
               w3t_ref, b3_ref, o_ref):
        # ---- inverted_conv: 1x1 (BN scale folded in) + bias + ReLU6 over halo'd strip ----
        x = x_ref[0, 0]                                           # (Cin, HP)
        y1 = jnp.dot(w1t_ref[...], x, preferred_element_type=jnp.float32)
        y1 = jnp.clip(y1 + b1_ref[...], 0.0, 6.0).astype(dw_dtype)
        # Zero the top/bottom halo rows at the image border (SAME zero padding
        # applies to the *activation* y1, not to x); all-ones for interior strips.
        y1 = y1 * rm_ref[0]                                       # (Cmid, HP)

        # ---- depth_conv: 3x3 depthwise, stride 1, SAME, as grouped shifted adds ----
        # Output lane i corresponds to halo'd-strip lane i + W (interior rows),
        # so tap (dh, dw) is a static lane rotate by (dh+1)*W + dw (XLU slot).
        wd = wd_ref[...]                                          # (Cmid, 9), k = (dh+1)*3+(dw+1)
        cm = cm_ref[...]                                          # (2, TW) column masks

        def tap_group(dw):
            g = None
            for dh in (-1, 0, 1):
                k = (dh + 1) * 3 + (dw + 1)
                shift = (-((dh + 1) * W + dw)) % HP
                t = y1 if shift == 0 else pltpu.roll(y1, shift, 1)
                term = t * wd[:, k:k + 1]
                g = term if g is None else g + term
            return g[:, :TW]                                      # keep interior rows only

        acc = (tap_group(0)
               + tap_group(-1) * cm[0:1, :]
               + tap_group(1) * cm[1:2, :])
        y2 = jnp.clip(acc.astype(jnp.float32) + b2_ref[...], 0.0, 6.0)   # (Cmid, TW)

        # ---- point_conv: 1x1 (BN scale folded in) + bias, no activation ----
        y3 = jnp.dot(w3t_ref[...], y2.astype(w3t_ref.dtype),
                     preferred_element_type=jnp.float32)
        o_ref[0] = (y3 + b3_ref[...]).astype(o_ref.dtype)         # (Cout, TW)

    return kernel


def _pick_tile_h(H, W, target_lanes=2048):
    """Largest TH dividing H with TH*W a multiple of 128 and <= target_lanes."""
    cands = [th for th in range(1, H)
             if H % th == 0 and (th * W) % 128 == 0 and th * W <= target_lanes]
    return max(cands) if cands else H


def mbconv_pallas(x_nchw, w1, s1, b1, wd, s2, b2, w3, s3, b3, *,
                  tile_h=None, mxu_dtype=jnp.bfloat16, dw_dtype=jnp.float32):
    """x_nchw: (N, Cin, H, W). Returns (N, Cout, H, W) float32.

    mxu_dtype: dtype of the two 1x1-conv MXU operands (bf16 recommended on all
    generations).  dw_dtype: dtype of the depthwise/VPU stage (bf16 on v6e/v7x,
    keep f32 on v5e which has no bf16 VALU).
    """
    N, Cin, H, W = x_nchw.shape
    Cmid = w1.shape[1]
    Cout = w3.shape[1]
    HW = H * W

    TH = tile_h if tile_h is not None else _pick_tile_h(H, W)
    assert H % TH == 0 and ((TH * W) % 128 == 0 or TH == H), (TH, H, W)
    nS = H // TH
    TW = TH * W
    HS = (TH + 2) * W
    HP = ((HS + 127) // 128) * 128          # lane-pad the halo'd strip to a vreg multiple

    # ---- trace-time weight prep: fold BN scales into the conv weights ----
    w1t = jnp.transpose(w1 * s1.reshape(1, Cmid)).astype(mxu_dtype)      # (Cmid, Cin)
    wd9 = jnp.transpose(
        (wd[:, :, 0, :] * s2.reshape(1, 1, Cmid)).reshape(9, Cmid)).astype(dw_dtype)  # (Cmid, 9)
    w3t = jnp.transpose(w3 * s3.reshape(1, Cout)).astype(mxu_dtype)      # (Cout, Cmid)
    b1c = b1.reshape(Cmid, 1).astype(jnp.float32)
    b2c = b2.reshape(Cmid, 1).astype(jnp.float32)
    b3c = b3.reshape(Cout, 1).astype(jnp.float32)

    # ---- overlapping row strips of x with a 1-row zero halo, flattened & lane-padded ----
    # TODO(synk): for very large inputs, fetch the 1-row halo with a manual DMA
    # (memory_space=pl.ANY) instead of materializing the overlapped copy in HBM.
    xp = jnp.pad(x_nchw, ((0, 0), (0, 0), (1, 1), (0, 0)))               # (N, Cin, H+2, W)
    x_strips = jnp.stack(
        [xp[:, :, s * TH: s * TH + TH + 2, :] for s in range(nS)],
        axis=1).reshape(N, nS, Cin, HS)
    x_strips = jnp.pad(
        x_strips, ((0, 0), (0, 0), (0, 0), (0, HP - HS))).astype(mxu_dtype)

    # Per-strip row mask: zero the top halo row of the first strip, the bottom
    # halo row of the last strip, and the lane padding; all-ones elsewhere.
    rm = jnp.ones((nS, HS), jnp.float32)
    rm = rm.at[0, :W].set(0.0)
    rm = rm.at[nS - 1, HS - W:].set(0.0)
    rm = jnp.pad(rm, ((0, 0), (0, HP - HS))).reshape(nS, 1, HP).astype(dw_dtype)

    # Column validity masks for the dw = -1 / +1 tap groups (interior lanes).
    col = jnp.arange(TW, dtype=jnp.int32) % W
    cmask = jnp.stack([(col >= 1), (col <= W - 2)]).astype(dw_dtype)     # (2, TW)

    # TODO(synk): for late EfficientViT stages (7x7/14x14) pack several batch
    # images along the lane axis so stores stay lane-dense.

    def full(arr):
        nd = arr.ndim
        return pl.BlockSpec(arr.shape, lambda n, s, _nd=nd: (0,) * _nd)

    out = pl.pallas_call(
        make_mbconv_kernel(W, TH, HP, dw_dtype),
        out_shape=jax.ShapeDtypeStruct((N, Cout, HW), jnp.float32),
        grid=(N, nS),
        in_specs=[
            pl.BlockSpec((1, 1, Cin, HP), lambda n, s: (n, s, 0, 0)),    # x strip (+halo)
            full(w1t), full(b1c),
            pl.BlockSpec((1, 1, HP), lambda n, s: (s, 0, 0)),            # per-strip row mask
            full(wd9), full(b2c), full(cmask),
            full(w3t), full(b3c),
        ],
        out_specs=pl.BlockSpec((1, Cout, TW), lambda n, s: (n, 0, s)),
        compiler_params=pltpu.CompilerParams(
            dimension_semantics=("parallel", "parallel"),   # batch x strip -> v7x dual TC
            vmem_limit_bytes=48 * 1024 * 1024,
        ),
    )(x_strips, w1t, b1c, rm, wd9, b2c, cmask, w3t, b3c)
    return out.reshape(N, Cout, H, W)


def fold_bn(gamma, beta, mean, var, eps=1e-5):
    scale = gamma / jnp.sqrt(var + eps)
    bias = beta - mean * scale
    return scale[None, :], bias[None, :]                  # (1, C) each


def reference_nhwc(x, w1, s1, b1, wd, s2, b2, w3, s3, b3, Cmid):
    """Pure-JAX reference (NHWC, lax.conv) used to validate the Pallas kernel."""
    dn = ("NHWC", "HWIO", "NHWC")
    y = jax.lax.conv_general_dilated(x, w1[None, None], (1, 1), "SAME",
                                     dimension_numbers=dn)
    y = jnp.clip(y * s1 + b1, 0.0, 6.0)
    y = jax.lax.conv_general_dilated(y, wd, (1, 1), "SAME",
                                     dimension_numbers=dn,
                                     feature_group_count=Cmid)
    y = jnp.clip(y * s2 + b2, 0.0, 6.0)
    y = jax.lax.conv_general_dilated(y, w3[None, None], (1, 1), "SAME",
                                     dimension_numbers=dn)
    return y * s3 + b3


if __name__ == "__main__":
    # Small shapes consistent with MBConv(in=4, out=8, expand_ratio=6) -> mid=24.
    N, Cin, H, W = 2, 4, 16, 16
    expand_ratio = 6
    Cmid = round(Cin * expand_ratio)                        # 24
    Cout = 8

    key = jax.random.PRNGKey(0)
    ks = jax.random.split(key, 16)

    x_nchw = jax.random.normal(ks[0], (N, Cin, H, W), jnp.float32)

    # Conv weights (use_bias=False everywhere, as in the module defaults).
    w1 = jax.random.normal(ks[1], (Cin, Cmid), jnp.float32) * 0.3       # 1x1: (I, O)
    wd = jax.random.normal(ks[2], (3, 3, 1, Cmid), jnp.float32) * 0.3   # HWIO depthwise
    w3 = jax.random.normal(ks[3], (Cmid, Cout), jnp.float32) * 0.3      # 1x1: (I, O)

    # BatchNorm parameters (inference mode), folded to per-channel scale/bias.
    def bn_params(kg, kb, km, kv, C):
        gamma = jax.random.uniform(kg, (C,), jnp.float32, 0.5, 1.5)
        beta = jax.random.normal(kb, (C,), jnp.float32) * 0.1
        mean = jax.random.normal(km, (C,), jnp.float32) * 0.1
        var = jax.random.uniform(kv, (C,), jnp.float32, 0.5, 1.5)
        return fold_bn(gamma, beta, mean, var)

    s1, b1 = bn_params(ks[4], ks[5], ks[6], ks[7], Cmid)
    s2, b2 = bn_params(ks[8], ks[9], ks[10], ks[11], Cmid)
    s3, b3 = bn_params(ks[12], ks[13], ks[14], ks[15], Cout)

    x_nhwc = jnp.transpose(x_nchw, (0, 2, 3, 1))
    ref = jnp.transpose(
        reference_nhwc(x_nhwc, w1, s1, b1, wd, s2, b2, w3, s3, b3, Cmid),
        (0, 3, 1, 2))

    # 1) Exact-path validation: f32 everywhere.  Auto tile_h=8 here, so the
    #    multi-strip / halo / column-mask logic is exercised and checked tight.
    out_f32 = mbconv_pallas(x_nchw, w1, s1, b1, wd, s2, b2, w3, s3, b3,
                            mxu_dtype=jnp.float32, dw_dtype=jnp.float32)
    out_f32 = jax.block_until_ready(out_f32)
    assert out_f32.shape == (N, Cout, H, W)
    assert jnp.allclose(out_f32, ref, atol=1e-3, rtol=1e-3), (
        float(jnp.max(jnp.abs(out_f32 - ref))))

    # 2) Performance config: bf16 MXU operands + bf16 depthwise stage (the
    #    v6e/v7x recommendation).  Relaxed tolerance per review; the structural
    #    correctness is guaranteed by the exact f32 run above.
    out_bf16 = mbconv_pallas(x_nchw, w1, s1, b1, wd, s2, b2, w3, s3, b3,
                             mxu_dtype=jnp.bfloat16, dw_dtype=jnp.bfloat16)
    out_bf16 = jax.block_until_ready(out_bf16)
    assert jnp.allclose(out_bf16, ref, atol=0.5, rtol=0.1), (
        float(jnp.max(jnp.abs(out_bf16 - ref))))

    print("KERNEL_OK")
</pallas_src>

<mosaic_0001>
module attributes {stable_mosaic.version = 11 : i64} {
  func.func @kernel(%arg0: i32, %arg1: i32, %arg2: memref<1x1x4x256xf32, #tpu.memory_space<vmem>>, %arg3: memref<24x4xf32, #tpu.memory_space<vmem>>, %arg4: memref<24x1xf32, #tpu.memory_space<vmem>>, %arg5: memref<1x1x256xf32, #tpu.memory_space<vmem>>, %arg6: memref<24x9xf32, #tpu.memory_space<vmem>>, %arg7: memref<24x1xf32, #tpu.memory_space<vmem>>, %arg8: memref<2x128xf32, #tpu.memory_space<vmem>>, %arg9: memref<8x24xf32, #tpu.memory_space<vmem>>, %arg10: memref<8x1xf32, #tpu.memory_space<vmem>>, %arg11: memref<1x8x128xf32, #tpu.memory_space<vmem>>) attributes {dimension_semantics = [#tpu.dimension_semantics<parallel>, #tpu.dimension_semantics<parallel>], iteration_bounds = array<i64: 2, 2>, scalar_prefetch = 0 : i64, scratch_operands = 0 : i64, tpu.core_type = #tpu.core_type<tc>, window_params = [{transform_indices = @transform_0, window_bounds = array<i64: 1, 1, 4, 256>}, {pipeline_mode = #tpu.pipeline_mode<synchronous>, transform_indices = @transform_1, window_bounds = array<i64: 24, 4>}, {pipeline_mode = #tpu.pipeline_mode<synchronous>, transform_indices = @transform_2, window_bounds = array<i64: 24, 1>}, {transform_indices = @transform_3, window_bounds = array<i64: 1, 1, 256>}, {pipeline_mode = #tpu.pipeline_mode<synchronous>, transform_indices = @transform_4, window_bounds = array<i64: 24, 9>}, {pipeline_mode = #tpu.pipeline_mode<synchronous>, transform_indices = @transform_5, window_bounds = array<i64: 24, 1>}, {pipeline_mode = #tpu.pipeline_mode<synchronous>, transform_indices = @transform_6, window_bounds = array<i64: 2, 128>}, {pipeline_mode = #tpu.pipeline_mode<synchronous>, transform_indices = @transform_7, window_bounds = array<i64: 8, 24>}, {pipeline_mode = #tpu.pipeline_mode<synchronous>, transform_indices = @transform_8, window_bounds = array<i64: 8, 1>}, {transform_indices = @transform_9, window_bounds = array<i64: 1, 8, 128>}]} {
    %c0 = arith.constant 0 : index
    %c0_0 = arith.constant 0 : index
    %c0_1 = arith.constant 0 : index
    %c0_2 = arith.constant 0 : index
    %0 = vector.load %arg2[%c0, %c0_0, %c0_1, %c0_2] : memref<1x1x4x256xf32, #tpu.memory_space<vmem>>, vector<1x1x4x256xf32>
    %1 = vector.shape_cast %0 : vector<1x1x4x256xf32> to vector<4x256xf32>
    %c0_3 = arith.constant 0 : index
    %c0_4 = arith.constant 0 : index
    %2 = vector.load %arg3[%c0_3, %c0_4] : memref<24x4xf32, #tpu.memory_space<vmem>>, vector<24x4xf32>
    %cst = arith.constant dense<0.000000e+00> : vector<24x256xf32>
    %3 = tpu.matmul %2, %1, %cst {dimension_numbers = #tpu.dot_dimension_numbers<[1], [0], [0], [1], [0, 0, 1, 1], [], []>} : vector<24x4xf32>, vector<4x256xf32>, vector<24x256xf32> -> vector<24x256xf32>
    %c0_5 = arith.constant 0 : index
    %c0_6 = arith.constant 0 : index
    %4 = vector.load %arg4[%c0_5, %c0_6] : memref<24x1xf32, #tpu.memory_space<vmem>>, vector<24x1xf32>
    %5 = vector.broadcast %4 : vector<24x1xf32> to vector<24x256xf32>
    %6 = arith.addf %3, %5 : vector<24x256xf32>
    %cst_7 = arith.constant 0.000000e+00 : f32
    %cst_8 = arith.constant 6.000000e+00 : f32
    %7 = vector.broadcast %cst_7 : f32 to vector<24x256xf32>
    %8 = arith.maximumf %7, %6 : vector<24x256xf32>
    %9 = vector.broadcast %cst_8 : f32 to vector<24x256xf32>
    %10 = arith.minimumf %9, %8 : vector<24x256xf32>
    %c0_9 = arith.constant 0 : index
    %c0_10 = arith.constant 0 : index
    %c0_11 = arith.constant 0 : index
    %11 = vector.load %arg5[%c0_9, %c0_10, %c0_11] : memref<1x1x256xf32, #tpu.memory_space<vmem>>, vector<1x1x256xf32>
    %12 = vector.shape_cast %11 : vector<1x1x256xf32> to vector<1x256xf32>
    %13 = vector.broadcast %12 : vector<1x256xf32> to vector<24x256xf32>
    %14 = arith.mulf %10, %13 : vector<24x256xf32>
    %c0_12 = arith.constant 0 : index
    %c0_13 = arith.constant 0 : index
    %15 = vector.load %arg6[%c0_12, %c0_13] : memref<24x9xf32, #tpu.memory_space<vmem>>, vector<24x9xf32>
    %c0_14 = arith.constant 0 : index
    %c0_15 = arith.constant 0 : index
    %16 = vector.load %arg8[%c0_14, %c0_15] : memref<2x128xf32, #tpu.memory_space<vmem>>, vector<2x128xf32>
    %17 = vector.extract_strided_slice %15 {offsets = [0, 1], sizes = [24, 1], strides = [1, 1]} : vector<24x9xf32> to vector<24x1xf32>
    %18 = vector.broadcast %17 : vector<24x1xf32> to vector<24x256xf32>
    %19 = arith.mulf %14, %18 : vector<24x256xf32>
    %c240_i32 = arith.constant 240 : i32
    %20 = tpu.dynamic_rotate %14 by %c240_i32 dim 1 : vector<24x256xf32>, i32 -> vector<24x256xf32>
    %21 = vector.extract_strided_slice %15 {offsets = [0, 4], sizes = [24, 1], strides = [1, 1]} : vector<24x9xf32> to vector<24x1xf32>
    %22 = vector.broadcast %21 : vector<24x1xf32> to vector<24x256xf32>
    %23 = arith.mulf %20, %22 : vector<24x256xf32>
    %24 = arith.addf %19, %23 : vector<24x256xf32>
    %c224_i32 = arith.constant 224 : i32
    %25 = tpu.dynamic_rotate %14 by %c224_i32 dim 1 : vector<24x256xf32>, i32 -> vector<24x256xf32>
    %26 = vector.extract_strided_slice %15 {offsets = [0, 7], sizes = [24, 1], strides = [1, 1]} : vector<24x9xf32> to vector<24x1xf32>
    %27 = vector.broadcast %26 : vector<24x1xf32> to vector<24x256xf32>
    %28 = arith.mulf %25, %27 : vector<24x256xf32>
    %29 = arith.addf %24, %28 : vector<24x256xf32>
    %30 = vector.extract_strided_slice %29 {offsets = [0, 0], sizes = [24, 128], strides = [1, 1]} : vector<24x256xf32> to vector<24x128xf32>
    %c1_i32 = arith.constant 1 : i32
    %31 = tpu.dynamic_rotate %14 by %c1_i32 dim 1 : vector<24x256xf32>, i32 -> vector<24x256xf32>
    %32 = vector.extract_strided_slice %15 {offsets = [0, 0], sizes = [24, 1], strides = [1, 1]} : vector<24x9xf32> to vector<24x1xf32>
    %33 = vector.broadcast %32 : vector<24x1xf32> to vector<24x256xf32>
    %34 = arith.mulf %31, %33 : vector<24x256xf32>
    %c241_i32 = arith.constant 241 : i32
    %35 = tpu.dynamic_rotate %14 by %c241_i32 dim 1 : vector<24x256xf32>, i32 -> vector<24x256xf32>
    %36 = vector.extract_strided_slice %15 {offsets = [0, 3], sizes = [24, 1], strides = [1, 1]} : vector<24x9xf32> to vector<24x1xf32>
    %37 = vector.broadcast %36 : vector<24x1xf32> to vector<24x256xf32>
    %38 = arith.mulf %35, %37 : vector<24x256xf32>
    %39 = arith.addf %34, %38 : vector<24x256xf32>
    %c225_i32 = arith.constant 225 : i32
    %40 = tpu.dynamic_rotate %14 by %c225_i32 dim 1 : vector<24x256xf32>, i32 -> vector<24x256xf32>
    %41 = vector.extract_strided_slice %15 {offsets = [0, 6], sizes = [24, 1], strides = [1, 1]} : vector<24x9xf32> to vector<24x1xf32>
    %42 = vector.broadcast %41 : vector<24x1xf32> to vector<24x256xf32>
    %43 = arith.mulf %40, %42 : vector<24x256xf32>
    %44 = arith.addf %39, %43 : vector<24x256xf32>
    %45 = vector.extract_strided_slice %44 {offsets = [0, 0], sizes = [24, 128], strides = [1, 1]} : vector<24x256xf32> to vector<24x128xf32>
    %46 = vector.extract_strided_slice %16 {offsets = [0, 0], sizes = [1, 128], strides = [1, 1]} : vector<2x128xf32> to vector<1x128xf32>
    %47 = vector.broadcast %46 : vector<1x128xf32> to vector<24x128xf32>
    %48 = arith.mulf %45, %47 : vector<24x128xf32>
    %49 = arith.addf %30, %48 : vector<24x128xf32>
    %c255_i32 = arith.constant 255 : i32
    %50 = tpu.dynamic_rotate %14 by %c255_i32 dim 1 : vector<24x256xf32>, i32 -> vector<24x256xf32>
    %51 = vector.extract_strided_slice %15 {offsets = [0, 2], sizes = [24, 1], strides = [1, 1]} : vector<24x9xf32> to vector<24x1xf32>
    %52 = vector.broadcast %51 : vector<24x1xf32> to vector<24x256xf32>
    %53 = arith.mulf %50, %52 : vector<24x256xf32>
    %c239_i32 = arith.constant 239 : i32
    %54 = tpu.dynamic_rotate %14 by %c239_i32 dim 1 : vector<24x256xf32>, i32 -> vector<24x256xf32>
    %55 = vector.extract_strided_slice %15 {offsets = [0, 5], sizes = [24, 1], strides = [1, 1]} : vector<24x9xf32> to vector<24x1xf32>
    %56 = vector.broadcast %55 : vector<24x1xf32> to vector<24x256xf32>
    %57 = arith.mulf %54, %56 : vector<24x256xf32>
    %58 = arith.addf %53, %57 : vector<24x256xf32>
    %c223_i32 = arith.constant 223 : i32
    %59 = tpu.dynamic_rotate %14 by %c223_i32 dim 1 : vector<24x256xf32>, i32 -> vector<24x256xf32>
    %60 = vector.extract_strided_slice %15 {offsets = [0, 8], sizes = [24, 1], strides = [1, 1]} : vector<24x9xf32> to vector<24x1xf32>
    %61 = vector.broadcast %60 : vector<24x1xf32> to vector<24x256xf32>
    %62 = arith.mulf %59, %61 : vector<24x256xf32>
    %63 = arith.addf %58, %62 : vector<24x256xf32>
    %64 = vector.extract_strided_slice %63 {offsets = [0, 0], sizes = [24, 128], strides = [1, 1]} : vector<24x256xf32> to vector<24x128xf32>
    %65 = vector.extract_strided_slice %16 {offsets = [1, 0], sizes = [1, 128], strides = [1, 1]} : vector<2x128xf32> to vector<1x128xf32>
    %66 = vector.broadcast %65 : vector<1x128xf32> to vector<24x128xf32>
    %67 = arith.mulf %64, %66 : vector<24x128xf32>
    %68 = arith.addf %49, %67 : vector<24x128xf32>
    %c0_16 = arith.constant 0 : index
    %c0_17 = arith.constant 0 : index
    %69 = vector.load %arg7[%c0_16, %c0_17] : memref<24x1xf32, #tpu.memory_space<vmem>>, vector<24x1xf32>
    %70 = vector.broadcast %69 : vector<24x1xf32> to vector<24x128xf32>
    %71 = arith.addf %68, %70 : vector<24x128xf32>
    %cst_18 = arith.constant 0.000000e+00 : f32
    %cst_19 = arith.constant 6.000000e+00 : f32
    %72 = vector.broadcast %cst_18 : f32 to vector<24x128xf32>
    %73 = arith.maximumf %72, %71 : vector<24x128xf32>
    %74 = vector.broadcast %cst_19 : f32 to vector<24x128xf32>
    %75 = arith.minimumf %74, %73 : vector<24x128xf32>
    %c0_20 = arith.constant 0 : index
    %c0_21 = arith.constant 0 : index
    %76 = vector.load %arg9[%c0_20, %c0_21] : memref<8x24xf32, #tpu.memory_space<vmem>>, vector<8x24xf32>
    %cst_22 = arith.constant dense<0.000000e+00> : vector<8x128xf32>
    %77 = tpu.matmul %76, %75, %cst_22 {dimension_numbers = #tpu.dot_dimension_numbers<[1], [0], [0], [1], [0, 0, 1, 1], [], []>} : vector<8x24xf32>, vector<24x128xf32>, vector<8x128xf32> -> vector<8x128xf32>
    %c0_23 = arith.constant 0 : index
    %c0_24 = arith.constant 0 : index
    %78 = vector.load %arg10[%c0_23, %c0_24] : memref<8x1xf32, #tpu.memory_space<vmem>>, vector<8x1xf32>
    %79 = vector.broadcast %78 : vector<8x1xf32> to vector<8x128xf32>
    %80 = arith.addf %77, %79 : vector<8x128xf32>
    %c0_25 = arith.constant 0 : index
    %c0_26 = arith.constant 0 : index
    %c0_27 = arith.constant 0 : index
    %81 = vector.load %arg11[%c0_25, %c0_26, %c0_27] : memref<1x8x128xf32, #tpu.memory_space<vmem>>, vector<1x8x128xf32>
    %82 = vector.shape_cast %81 : vector<1x8x128xf32> to vector<8x128xf32>
    %83 = vector.shape_cast %80 : vector<8x128xf32> to vector<1x8x128xf32>
    tpu.vector_store %arg11[%c0_25, %c0_26, %c0_27], %83 {strides = array<i32>} : memref<1x8x128xf32, #tpu.memory_space<vmem>>, vector<1x8x128xf32>,
    return
  }
  func.func @transform_0(%arg0: i32, %arg1: i32) -> (i32, i32, i32, i32) {
    %c0_i32 = arith.constant 0 : i32
    %c0_i32_0 = arith.constant 0 : i32
    %c0_i32_1 = arith.constant 0 : i32
    return %arg0, %arg1, %c0_i32, %c0_i32_0 : i32, i32, i32, i32
  }
  func.func @transform_1(%arg0: i32, %arg1: i32) -> (i32, i32) {
    %c0_i32 = arith.constant 0 : i32
    %c0_i32_0 = arith.constant 0 : i32
    %c0_i32_1 = arith.constant 0 : i32
    return %c0_i32, %c0_i32_0 : i32, i32
  }
  func.func @transform_2(%arg0: i32, %arg1: i32) -> (i32, i32) {
    %c0_i32 = arith.constant 0 : i32
    %c0_i32_0 = arith.constant 0 : i32
    %c0_i32_1 = arith.constant 0 : i32
    return %c0_i32, %c0_i32_0 : i32, i32
  }
  func.func @transform_3(%arg0: i32, %arg1: i32) -> (i32, i32, i32) {
    %c0_i32 = arith.constant 0 : i32
    %c0_i32_0 = arith.constant 0 : i32
    %c0_i32_1 = arith.constant 0 : i32
    return %arg1, %c0_i32, %c0_i32_0 : i32, i32, i32
  }
  func.func @transform_4(%arg0: i32, %arg1: i32) -> (i32, i32) {
    %c0_i32 = arith.constant 0 : i32
    %c0_i32_0 = arith.constant 0 : i32
    %c0_i32_1 = arith.constant 0 : i32
    return %c0_i32, %c0_i32_0 : i32, i32
  }
  func.func @transform_5(%arg0: i32, %arg1: i32) -> (i32, i32) {
    %c0_i32 = arith.constant 0 : i32
    %c0_i32_0 = arith.constant 0 : i32
    %c0_i32_1 = arith.constant 0 : i32
    return %c0_i32, %c0_i32_0 : i32, i32
  }
  func.func @transform_6(%arg0: i32, %arg1: i32) -> (i32, i32) {
    %c0_i32 = arith.constant 0 : i32
    %c0_i32_0 = arith.constant 0 : i32
    %c0_i32_1 = arith.constant 0 : i32
    return %c0_i32, %c0_i32_0 : i32, i32
  }
  func.func @transform_7(%arg0: i32, %arg1: i32) -> (i32, i32) {
    %c0_i32 = arith.constant 0 : i32
    %c0_i32_0 = arith.constant 0 : i32
    %c0_i32_1 = arith.constant 0 : i32
    return %c0_i32, %c0_i32_0 : i32, i32
  }
  func.func @transform_8(%arg0: i32, %arg1: i32) -> (i32, i32) {
    %c0_i32 = arith.constant 0 : i32
    %c0_i32_0 = arith.constant 0 : i32
    %c0_i32_1 = arith.constant 0 : i32
    return %c0_i32, %c0_i32_0 : i32, i32
  }
  func.func @transform_9(%arg0: i32, %arg1: i32) -> (i32, i32, i32) {
    %c0_i32 = arith.constant 0 : i32
    %c0_i32_0 = arith.constant 0 : i32
    return %arg0, %c0_i32, %arg1 : i32, i32, i32
  }
}

</mosaic_0001>

<bundles_post_ra>
// kernel: tpu_custom_call.1
= control target key start
LH: loop header
LB: loop body
LE: loop exit
PB: predicated region body
PF: predicated region fallthrough
CT: control target
= control target key end

     0   :  { %14 = vsyncpa [#allocation3], 0  ;;  %s1871_s0 = inlined_call_operand.vmem [shape: f32[2,2,4,256], index: 0, kind: input, shape index: {}]   ;;  %s1872_s1 = inlined_call_operand.vmem [shape: f32[24,4], index: 1, kind: input, shape index: {}]   ;;  %s1873_s2 = inlined_call_operand.vmem [shape: f32[24,1], index: 2, kind: input, shape index: {}]   ;;  %s1874_s3 = inlined_call_operand.vmem [shape: f32[2,1,256], index: 3, kind: input, shape index: {}]   ;;  %s1875_s4 = inlined_call_operand.vmem [shape: f32[24,9], index: 4, kind: input, shape index: {}]   ;;  %s1876_s5 = inlined_call_operand.vmem [shape: f32[24,1], index: 5, kind: input, shape index: {}]   ;;  %s1877_s6 = inlined_call_operand.vmem [shape: f32[2,128], index: 6, kind: input, shape index: {}]   ;;  %s1878_s7 = inlined_call_operand.vmem [shape: f32[8,24], index: 7, kind: input, shape index: {}]   ;;  %s1879_s8 = inlined_call_operand.vmem [shape: f32[8,1], index: 8, kind: input, shape index: {}]   ;;  %s1880_s9 = inlined_call_operand.hbm [shape: f32[2,8,256], index: 9, kind: output, shape index: {}]  }
   0x1   :  { %16 = vsyncpa [#allocation3 + $0x1], 0  ;;  %s1372_s30 = smov 0   ;;  %s1374_s10 = smov 0  }
   0x2   :  { %s1376_s11 = smov 0   ;;  %s1378_s12 = smov 0  }
   0x3   :  { %s1380_s13 = smov 0   ;;  %s1382_s14 = smov 0  }
   0x4   :  { %s1384_s15 = smov 0   ;;  %s1386_s16 = smov 0  }
   0x5 LB: > { %1885 = sst [smem:[#allocation5_spill]] %s1291_s14  ;;  %s1056_s17 = sadd.s32 4294967295, %s1299_s16   ;;  %s1299_s16 = sphi %s1386_s16, %s22_s16   ;;  %s1295_s15 = sphi %s1384_s15, %s1894_s15   ;;  %s1291_s14 = sphi %s1382_s14, %s1893_s14   ;;  %s1287_s13 = sphi %s1380_s13, %s1892_s13   ;;  %s1283_s12 = sphi %s1378_s12, %s1891_s12   ;;  %s1279_s11 = sphi %s1376_s11, %s1897_s11   ;;  %s1275_s10 = sphi %s1374_s10, %s1896_s10   ;;  %s1271_s30 = sphi %s1372_s30, %s1895_s30  }
   0x6   : > { %1886 = sst [smem:[#allocation6_spill]] %s1295_s15  ;;  %s1057_s18 = sadd.s32 4294967294, %s1299_s16  }
   0x7   : > { %s31_s19 = sadd.s32 1, %s1291_s14  ;;  %s34_s20 = sadd.s32 1, %s1295_s15 }
   0x8   : > { %p32_p0 = scmp.ge.s32.totalorder %s31_s19, 2  ;;  %p254_p1 = scmp.ne.s32.totalorder %s1279_s11, %s1275_s10 }
   0x9   : > { %p255_p2 = scmp.eq.s32.totalorder %s1056_s17, 3  ;;  %p260_p5 = scmp.ne.s32.totalorder %s1275_s10, %s1271_s30 }
   0xa   : > { %s1899_s19 = smov (%p32_p0, %s31_s19), 0  ;;  %s1901_s20 = smov (!%p32_p0, %s34_s20), %s1295_s15 }
   0xb   : > { %1887 = sst [smem:[#allocation7_spill]] %s1899_s19  ;;  %s240_s21 = ssub.s32 %s1291_s14, %s1899_s19 }
   0xc   : > { %p1423_p3 = por %p255_p2, %p254_p1  ;;  %p36_p4 = scmp.ge.s32.totalorder %s1901_s20, 2 }
   0xd   : > { %p261_p6 = scmp.eq.s32.totalorder %s1057_s18, 3  ;;  %p1060_p7 = scmp.ge.s32.totalorder %s1299_s16, 1 }
   0xe   : > { %s1903_s20 = smov (%p36_p4, %s1901_s20), 0  ;;  %p319_p9 = scmp.lt.s32.totalorder %s1299_s16, 5 }
   0xf   : > { %1889 = sst [smem:[#allocation8_spill]] %s1903_s20  ;;  %p1432_p8 = por %p261_p6, %p260_p5 }
  0x10   : > { %s239_s24 = ssub.s32 %s1295_s15, %s1903_s20  ;;  %s244_s25 = sadd.s32 1, %s1279_s11 }
  0x11   : > { %s241_s26 = sor.u32 %s240_s21, %s239_s24  ;;  %p320_p10 = pnand %p1060_p7, %p319_p9 }
  0x12   : > { %p242_p11 = scmp.eq.s32.totalorder %s241_s26, 0  ;;  %p363_p12 = scmp.lt.s32.totalorder (!%p320_p10), %s1287_s13, 1  ;;  %v1301_v0 = vmov (!%p320_p10), 0.0   ;;  %v1449_v1 = vld [vmem:[%s1875_s4] sm:$0xff] (!%p320_p10)  ;;  %v1302_v2 = vmov (!%p320_p10), 4   ;;  %v1461_v3 = vld [vmem:[%s1875_s4 + $0x8] sm:$0xff] (!%p320_p10)  ;;  %v512_v33 = vlaneseq (!%p320_p10) }
  0x13   : > { %323 = sbr.rel (%p320_p10) target bundleno = 741 (0x2e5), region = 56  ;;  %p365_p13 = scmp.lt.s32.totalorder (!%p320_p10), %s1283_s12, 1  ;;  %479 = vmatprep.mubr.f32.mxu0 (!%p320_p10), %v1301_v0  ;;  %1187 = vset.pattern.permute.xlu0 (!%p320_p10), %v1302_v2  ;;  %v1303_v4 = vmov (!%p320_p10), 0   ;;  %v382_v5 = vld [vmem:[%s1873_s2 + $0x10] sm:$0xff] (!%p320_p10)  ;;  %v1304_v6 = vmov (!%p320_p10), 3   ;;  %vm410_vm0 = vcmask (!%p320_p10), 1043456  }
  0x14   : > { %s1441_s27 = scalar_select %p242_p11, %s1279_s11, %s244_s25  }
  0x15   : > { %569 = vperm.xlu0 (!%p320_p10), %1187, %v1449_v1   ;;  %1184 = vset.pattern.permute.xlu1 (!%p320_p10), %v1303_v4  ;;  %v1476_v8 = vld [vmem:[%s1875_s4 + $0x10] sm:$0xff] (!%p320_p10)  ;;  %v377_v10 = vld [vmem:[%s1872_s1] sm:$0xff] (!%p320_p10)  ;;  %vm400_vm1 = vcmask (!%p320_p10), 31744   ;;  %v378_v11 = vld [vmem:[%s1872_s1 + $0x8] sm:$0xff] (!%p320_p10)  ;;  %v1305_v12 = vmov (!%p320_p10), 6   ;;  %v1306_v14 = vmov (!%p320_p10), 1  }
  0x16   : > { %395 = vperm.xlu1 (!%p320_p10), %1184, %v382_v5   ;;  %v379_v13 = vld [vmem:[%s1872_s1 + $0x10] sm:$0xff] (!%p320_p10)  ;;  %v1307_v15 = vmov (!%p320_p10), 2   ;;  %v1308_v16 = vmov (!%p320_p10), 5   ;;  %v1309_v17 = vmov (!%p320_p10), 7   ;;  %v1310_v18 = vmov (!%p320_p10), 8   ;;  %v380_v19 = vld [vmem:[%s1873_s2] sm:$0xff] (!%p320_p10) }
  0x17   : > { %v381_v20 = vld [vmem:[%s1873_s2 + $0x8] sm:$0xff] (!%p320_p10)  ;;  %v838_v21 = vld [vmem:[%s1876_s5] sm:$0xff] (!%p320_p10)  ;;  %v1556_v35 = vshrl.u32 (!%p320_p10), %v512_v33, 7  ;;  %s1314_s25 = smov (!%p320_p10), 97   ;;  %s1315_s26 = smov (!%p320_p10), 127   ;;  %vm1320_vm4 = vmmov (!%p320_p10), 0  }
  0x18   : > { %v839_v22 = vld [vmem:[%s1876_s5 + $0x8] sm:$0xff] (!%p320_p10)  ;;  %1087 = vmatprep.mubr.msk.f32.mxu1 (!%p320_p10), %vm1320_vm4, %v1301_v0  ;;  %vm872_vm11 = vcmask (!%p320_p10), 195584  }
  0x19   : > { %1188 = vset.pattern.permute.xlu0 (!%p320_p10), %v1304_v6  ;;  %v514_v37 = vsub.s32 (!%p320_p10), 0, %v1556_v35  ;;  %v518_v39 = vsub.s32 (!%p320_p10), 1, %v1556_v35 }
  0x1a   : > { %s364_s17 = scalar_select %p363_p12, %s1287_s13, 1  ;;  %672 = vperm.xlu0 %1188, %v1461_v3   ;;  %637 = vperm.xlu1 %1184, %v1449_v1  }
  0x1b   : > { %s1454_s18 = scalar_select %p365_p13, %s1283_s12, 1 }
  0x1c   : > { %s1063_s21 = sshll.u32 %s364_s17, 2  ;;  %s1313_s17 = smov 112  }
  0x1d   : > { %s1062_s24 = sshll.u32 %s1454_s18, 1  ;;  %s1311_s18 = smov 113  }
  0x1e   : > { %s369_s20 = sadd.s32 %s1063_s21, %s1062_s24  ;;  %676 = vperm.xlu0 %1188, %v1476_v8   ;;  %1185 = vset.pattern.permute.xlu1 %v1304_v6  ;;  %s375_s29 = scalar_lea.vmem %s1874_s3, %s1062_s24 }
  0x1f   : > { %s1064_s19 = sshll.u32 %s369_s20, 2  ;;  %668 = vperm.xlu1 %1185, %v1449_v1   ;;  %v510_v38 = vld [vmem:[%s375_s29] sm:$0x3]  ;;  %s1312_s24 = smov 1  }
  0x20   : > { %s371_s14 = scalar_lea.vmem %s1871_s0, %s1064_s19  ;;  %v515_v44 = vrot.slane %v510_v38, %v514_v37  ;;  %v519_v46 = vrot.slane %v510_v38, %v518_v39  ;;  %s1316_s21 = smov 111  }
  0x21   : > { %v376_v7 = vld [vmem:[%s371_s14] sm:$0xff]  ;;  %s1317_s20 = smov 96   ;;  %s1318_s14 = smov 95  }
  0x22   : > { %v399_v9 = vcombine.high %v376_v7, %v376_v7  ;;  %1195 = vset.pattern.permute.xlu0 %v1305_v12 }
  0x23   : > { %706 = vperm.xlu0 %1195, %v1461_v3   ;;  %1186 = vset.pattern.permute.xlu1 %v1306_v14 }
  0x24   : > { %1066 = vmatprep.subr.msk.mxu0 %vm410_vm0, %v399_v9  ;;  %534 = vperm.xlu1 %1186, %v1449_v1  }
  0x25   : > { %1067 = vmatpush1.msk.msra.mxu0 %vm410_vm0, %v376_v7 }
  0x26   : > { %1068 = vmatmul.mubr.msk.f32.vlgmr.msra.gmra.mrb[0].mxu0 %vm400_vm1, %v377_v10 }
  0x27   : > { %485 = vmatprep.mubr.f32.mxu0 %v1301_v0  ;;  %710 = vperm.xlu0 %1195, %v1476_v8  }
  0x28   : > { %539 = vperm.xlu1 %1186, %v1461_v3  }
  0x2a   : > { %1069 = vmatmul.mubr.msk.f32.gmra.mrb[2].mxu0 %vm400_vm1, %v378_v11 }
  0x2b   : > { %491 = vmatprep.mubr.f32.mxu0 %v1301_v0  ;;  %1198 = vset.pattern.permute.xlu0 %v1307_v15 }
  0x2c   : > { %754 = vperm.xlu0 %1198, %v1476_v8   ;;  %1189 = vset.pattern.permute.xlu1 %v1302_v2 }
  0x2d   : > { %573 = vperm.xlu1 %1189, %v1461_v3  }
  0x2e   : > { %1070 = vmatmul.mubr.msk.f32.gmra.mrb[4].mxu0 %vm400_vm1, %v379_v13 }
  0x30   : > { %1199 = vset.pattern.permute.xlu0 %v1308_v16 }
  0x31   : > { %777 = vperm.xlu0 %1199, %v1449_v1   ;;  %1190 = vset.pattern.permute.xlu1 %v1305_v12 }
  0x32   : > { %702 = vperm.xlu1 %1190, %v1449_v1  }
  0x35   : > { %785 = vperm.xlu0 %1199, %v1476_v8  }
  0x36   : > { %1191 = vset.pattern.permute.xlu1 %v1307_v15 }
  0x37   : > { %746 = vperm.xlu1 %1191, %v1449_v1  }
  0x39   : > { %1200 = vset.pattern.permute.xlu0 %v1309_v17 }
  0x3a   : > { %607 = vperm.xlu0 %1200, %v1461_v3  }
  0x3b   : > { %750 = vperm.xlu1 %1191, %v1461_v3  }
  0x3e   : > { %611 = vperm.xlu0 %1200, %v1476_v8  }
  0x3f   : > { %1192 = vset.pattern.permute.xlu1 %v1308_v16 }
  0x40   : > { %781 = vperm.xlu1 %1192, %v1461_v3  }
  0x42   : > { %1201 = vset.pattern.permute.xlu0 %v1310_v18 }
  0x43   : > { %819 = vperm.xlu0 %1201, %v1476_v8  }
  0x44   : > { %1193 = vset.pattern.permute.xlu1 %v1309_v17 }
  0x45   : > { %603 = vperm.xlu1 %1193, %v1449_v1  }
  0x47   : > { %1202 = vset.pattern.permute.xlu0 %v1303_v4 }
  0x48   : > { %385 = vperm.xlu0 %1202, %v380_v19   ;;  %v866_v19 = vld [vmem:[%s1879_s8] sm:$0xff] }
  0x49   : > { %1194 = vset.pattern.permute.xlu1 %v1310_v18 }
  0x4a   : > { %811 = vperm.xlu1 %1194, %v1449_v1  }
  0x4c   : > { %390 = vperm.xlu0 %1202, %v381_v20  }
  0x4e   : > { %815 = vperm.xlu1 %1194, %v1461_v3  }
  0x50   : > { %641 = vperm.xlu0 %1202, %v1461_v3  }
  0x52   : > { %1196 = vset.pattern.permute.xlu1 %v1306_v14 }
  0x53   : > { %544 = vperm.xlu1 %1196, %v1476_v8  }
  0x54   : > { %645 = vperm.xlu0 %1202, %v1476_v8  }
  0x57   : > { %1197 = vset.pattern.permute.xlu1 %v1302_v2 }
  0x58   : > { %843 = vperm.xlu0 %1202, %v838_v21   ;;  %577 = vperm.xlu1 %1197, %v1476_v8  }
  0x5c   : > { %1203 = vset.pattern.permute.xlu1 %v1303_v4 }
  0x5d   : > { %848 = vperm.xlu1 %1203, %v839_v22   ;;  %v1319_v22 = vmov 0.0|0.0  }
  0x5e   : > { %1090 = vmatprep.subr.bf16.mxu1 %v1319_v22 }
  0x94   : > { %v1533_v23 = vpop.permute.xlu0 %569 }
  0x95   : > { %v396_v57 = vpop.permute.xlu1 %395 }
  0x99   : > { %v1535_v24 = vpop.permute.xlu0 %672  ;;  %v1599_v11 = vpop.permute.xlu1 %637 }
  0x9d   : > { %v1537_v25 = vpop.permute.xlu0 %676 }
  0x9e   : > { %v1607_v12 = vpop.permute.xlu1 %668 }
  0xa2   : > { %v1539_v26 = vpop.permute.xlu0 %706 }
  0xa3   : > { %v1613_v13 = vpop.permute.xlu1 %534 }
  0xa6   : > { %v1541_v27 = vpop.permute.xlu0 %710 }
  0xa7   : > { %v1622_v14 = vpop.permute.xlu1 %539 }
  0xab   : > { %v1543_v28 = vpop.permute.xlu0 %754 }
  0xac   : > { %v1628_v15 = vpop.permute.xlu1 %573 }
  0xb0   : > { %v1545_v29 = vpop.permute.xlu0 %777 }
  0xb1   : > { %v1634_v16 = vpop.permute.xlu1 %702 }
  0xb4   : > { %v1547_v30 = vpop.permute.xlu0 %785 }
  0xb6   : > { %v1642_v17 = vpop.permute.xlu1 %746 }
  0xb9   : > { %v1549_v31 = vpop.permute.xlu0 %607 }
  0xba   : > { %v1647_v18 = vpop.permute.xlu1 %750 }
  0xbd   : > { %v1551_v32 = vpop.permute.xlu0 %611 }
  0xbf   : > { %v1656_v20 = vpop.permute.xlu1 %781 }
  0xc2   : > { %v1553_v34 = vpop.permute.xlu0 %819 }
  0xc4   : > { %v1659_v21 = vpop.permute.xlu1 %603 }
  0xc7   : > { %v386_v36 = vpop.permute.xlu0 %385 }
  0xcb   : > { %v391_v47 = vpop.permute.xlu0 %390 }
  0xf9   : > { %v481_v40 = vpop.f32.mrb[0].mxu0 }
  0xfa   : > { %v482_v41 = vadd.f32 %v481_v40, %v386_v36  ;;  %v483_v42 = vpop.f32.mrb[1].mxu0  ;;  %v1674_v40 = vpop.permute.xlu0 %641 }
  0xfb   : > { %v484_v43 = vadd.f32 %v483_v42, %v386_v36  ;;  %v1664_v36 = vpop.permute.xlu1 %811 }
  0xfc   : > { %v498_v45 = vmax.f32 %v482_v41, 0.0 }
  0xfd   : > { %v499_v48 = vmax.f32 %v484_v43, 0.0  ;;  %v487_v49 = vpop.f32.mrb[2].mxu0 }
  0xfe   : > { %v504_v50 = vmin.f32 %v498_v45, 6.0  ;;  %v488_v51 = vadd.f32 %v487_v49, %v391_v47  ;;  %v489_v52 = vpop.f32.mrb[3].mxu0  ;;  %v1682_v43 = vpop.permute.xlu0 %645  ;;  %v1700_v49 = vand.u32 127, %v512_v33 }
  0xff   : > { %v505_v53 = vmin.f32 %v499_v48, 6.0  ;;  %v490_v54 = vadd.f32 %v489_v52, %v391_v47  ;;  %v1668_v38 = vpop.permute.xlu1 %815  ;;  %v840_v48 = vld [vmem:[%s1876_s5 + $0x10] sm:$0xff] }
 0x100   : > { %v1569_v55 = vmul.f32 %v515_v44, %v504_v50  ;;  %v500_v56 = vmax.f32 %v488_v51, 0.0  ;;  %vm632_vm2 = vcmp.lt.s32.totalorder %v1700_v49, 1  ;;  %vm663_vm3 = vcmp.lt.s32.totalorder %v1700_v49, 113 }
 0x101   : > { %v523_v58 = vmul.f32 %v519_v46, %v505_v53  ;;  %v501_v59 = vmax.f32 %v490_v54, 0.0  ;;  %v493_v60 = vpop.f32.mrb[4].mxu0  ;;  %vm697_vm5 = vcmp.lt.s32.totalorder %v1700_v49, 97  ;;  %vm741_vm6 = vcmp.lt.s32.totalorder %v1700_v49, 127 }
 0x102   : > { %v506_v61 = vmin.f32 %v500_v56, 6.0  ;;  %651 = vrot.lane.b32.xlu1 %v1569_v55, %s1311_s18  ;;  %620 = vrot.lane.b32.xlu0 %v1569_v55, %s1312_s24  ;;  %v494_v62 = vadd.f32 %v493_v60, %v396_v57  ;;  %v495_v63 = vpop.f32.mrb[5].mxu0  ;;  %v1690_v45 = vpop.permute.xlu0 %843  ;;  %v531_v60 = vld [vmem:[%s1877_s6] sm:$0x3]  ;;  %vm564_vm7 = vcmp.lt.s32.totalorder %v1700_v49, 112  ;;  %vm772_vm8 = vcmp.lt.s32.totalorder %v1700_v49, 111 }
 0x103   : > { %v507_v1 = vmin.f32 %v501_v59, 6.0  ;;  %v496_v2 = vadd.f32 %v495_v63, %v396_v57  ;;  %v1676_v41 = vpop.permute.xlu1 %544  ;;  %vm598_vm9 = vcmp.lt.s32.totalorder %v1700_v49, 96  ;;  %vm806_vm10 = vcmp.lt.s32.totalorder %v1700_v49, 95  ;;  %v865_v49 = vld [vmem:[%s1878_s7] sm:$0xff] }
 0x104   : > { %v1575_v3 = vmul.f32 %v515_v44, %v506_v61  ;;  %v502_v4 = vmax.f32 %v494_v62, 0.0 }
 0x105   : > { %v525_v5 = vmul.f32 %v519_v46, %v507_v1  ;;  %v503_v6 = vmax.f32 %v496_v2, 0.0  ;;  %v1719_v2 = vrot.slane %v531_v60, %v514_v37  ;;  %v547_v37 = vmul.f32 %v1613_v13, %v1569_v55 }
 0x106   : > { %550 = vrot.lane.b32.xlu1 %v1569_v55, %s1313_s17  ;;  %685 = vrot.lane.b32.xlu0 %v1569_v55, %s1314_s25  ;;  %v508_v7 = vmin.f32 %v502_v4, 6.0 }
 0x107   : > { %v509_v8 = vmin.f32 %v503_v6, 6.0  ;;  %v1680_v42 = vpop.permute.xlu1 %577 }
 0x108   : > { %v1581_v9 = vmul.f32 %v515_v44, %v508_v7 }
 0x109   : > { %v1583_v10 = vmul.f32 %v519_v46, %v509_v8 }
 0x10a   : > { %729 = vrot.lane.b32.xlu1 %v1569_v55, %s1315_s26  ;;  %626 = vrot.lane.b32.xlu0 %v523_v58, %s1312_s24 }
 0x10b   : > { %v1688_v44 = vpop.permute.xlu1 %848 }
 0x10e   : > { %760 = vrot.lane.b32.xlu1 %v1569_v55, %s1316_s21  ;;  %657 = vrot.lane.b32.xlu0 %v523_v58, %s1311_s18 }
 0x112   : > { %586 = vrot.lane.b32.xlu1 %v1569_v55, %s1317_s20  ;;  %691 = vrot.lane.b32.xlu0 %v523_v58, %s1314_s25 }
 0x116   : > { %794 = vrot.lane.b32.xlu1 %v1569_v55, %s1318_s14  ;;  %735 = vrot.lane.b32.xlu0 %v523_v58, %s1315_s26 }
 0x11a   : > { %556 = vrot.lane.b32.xlu1 %v523_v58, %s1313_s17  ;;  %766 = vrot.lane.b32.xlu0 %v523_v58, %s1316_s21 }
 0x11e   : > { %622 = vrot.lane.b32.xlu1 %v1575_v3, %s1312_s24  ;;  %592 = vrot.lane.b32.xlu0 %v523_v58, %s1317_s20 }
 0x122   : > { %653 = vrot.lane.b32.xlu1 %v1575_v3, %s1311_s18  ;;  %800 = vrot.lane.b32.xlu0 %v523_v58, %s1318_s14 }
 0x126   : > { %687 = vrot.lane.b32.xlu1 %v1575_v3, %s1314_s25  ;;  %552 = vrot.lane.b32.xlu0 %v1575_v3, %s1313_s17 }
 0x12a   : > { %731 = vrot.lane.b32.xlu1 %v1575_v3, %s1315_s26  ;;  %558 = vrot.lane.b32.xlu0 %v525_v5, %s1313_s17 }
 0x12e   : > { %762 = vrot.lane.b32.xlu1 %v1575_v3, %s1316_s21  ;;  %655 = vrot.lane.b32.xlu0 %v1581_v9, %s1311_s18 }
 0x132   : > { %588 = vrot.lane.b32.xlu1 %v1575_v3, %s1317_s20  ;;  %560 = vrot.lane.b32.xlu0 %v1583_v10, %s1313_s17 }
 0x136   : > { %796 = vrot.lane.b32.xlu1 %v1575_v3, %s1318_s14  ;;  %695 = vrot.lane.b32.xlu0 %v1583_v10, %s1314_s25 }
 0x13a   : > { %628 = vrot.lane.b32.xlu1 %v525_v5, %s1312_s24  ;;  %739 = vrot.lane.b32.xlu0 %v1583_v10, %s1315_s26 }
 0x13e   : > { %659 = vrot.lane.b32.xlu1 %v525_v5, %s1311_s18  ;;  %770 = vrot.lane.b32.xlu0 %v1583_v10, %s1316_s21 }
 0x142   : > { %693 = vrot.lane.b32.xlu1 %v525_v5, %s1314_s25  ;;  %596 = vrot.lane.b32.xlu0 %v1583_v10, %s1317_s20 }
 0x146   : > { %737 = vrot.lane.b32.xlu1 %v525_v5, %s1315_s26  ;;  %804 = vrot.lane.b32.xlu0 %v1583_v10, %s1318_s14 }
 0x14a   : > { %768 = vrot.lane.b32.xlu1 %v525_v5, %s1316_s21  ;;  %869 = vperm.xlu0 %1202, %v866_v19  }
 0x14e   : > { %594 = vrot.lane.b32.xlu1 %v525_v5, %s1317_s20 }
 0x152   : > { %802 = vrot.lane.b32.xlu1 %v525_v5, %s1318_s14 }
 0x156   : > { %624 = vrot.lane.b32.xlu1 %v1581_v9, %s1312_s24 }
 0x15a   : > { %554 = vrot.lane.b32.xlu1 %v1581_v9, %s1313_s17  ;;  %s1321_s17 = smov [#allocation2]  }
 0x15e   : > { %689 = vrot.lane.b32.xlu1 %v1581_v9, %s1314_s25  ;;  %s1209_s25 = sshll.u32 %s1321_s17, 4  ;;  %s1210_s25 = int_to_ptr.vmem [resolvable:$false] %s1209_s25 }
 0x162   : > { %733 = vrot.lane.b32.xlu1 %v1581_v9, %s1315_s26  ;;  %s360_s26 = sand.u32 1, %s1275_s10  }
 0x166   : > { %764 = vrot.lane.b32.xlu1 %v1581_v9, %s1316_s21  ;;  %s1061_s21 = sshll.u32 %s360_s26, 3 }
 0x167   : > { %s362_s19 = scalar_lea.vmem [#allocation2], %s1061_s21  ;;  %s1211_s21 = scalar_lea.vmem %s1210_s25, 256 }
 0x168   : > { %s963_s28 = sshll.u32 %s362_s19, 4  ;;  %s1820_s28 = int_to_ptr.vmem [resolvable:$true] %s963_s28 }
 0x169   : > { %p1212_p4 = scmp.lt.s32.totalorder %s1820_s28, %s1210_s25 }
 0x16a   : > { %590 = vrot.lane.b32.xlu1 %v1581_v9, %s1317_s20  ;;  %s1073_s20 = sshll.u32 %s1287_s13, 1  ;;  %s948_s13 = scalar_lea.sflag [#allocation3], %s360_s26 }
 0x16e   : > { %630 = vrot.lane.b32.xlu1 %v1583_v10, %s1312_s24 }
 0x172   : > { %661 = vrot.lane.b32.xlu1 %v1583_v10, %s1311_s18 }
 0x174   : > { %v652_v46 = vpop.permute.xlu1 %651  ;;  %v621_v47 = vpop.permute.xlu0 %620 }
 0x176   : > { %798 = vrot.lane.b32.xlu1 %v1581_v9, %s1318_s14  ;;  %s959_s14 = sadd.s32 %s1283_s12, %s1073_s20  ;;  %s1205_s12 = scalar_lea.vmem %s1820_s28, 128 }
 0x177   : > { %s1074_s15 = sshll.u32 %s959_s14, 7  ;;  %p1206_p0 = scmp.ne.s32.totalorder %s1820_s28, %s1205_s12 }
 0x178   : > { %v551_v50 = vpop.permute.xlu1 %550  ;;  %v686_v51 = vpop.permute.xlu0 %685  ;;  %s1818_s24 = scalar_lea.hbm %s1880_s9, %s1074_s15  ;;  %p1213_p5 = scmp.lt.s32.totalorder %s1211_s21, %s1205_s12 }
 0x179   : > { %p1207_p1 = pnand %p1206_p0, %p1423_p3 }
 0x17a   : > { %853 = vperm.xlu1 %1203, %v840_v48   ;;  %p1214_p6 = por %p1213_p5, %p1212_p4 }
 0x17b   : > { %p1208_p2 = pneg %p1207_p1 }
 0x17c   : > { %v730_v52 = vpop.permute.xlu1 %729  ;;  %v627_v53 = vpop.permute.xlu0 %626 }
 0x17d   : > { %v633_v54 = vsel %vm632_vm2, %v627_v53, %v621_v47  ;;  %p1215_p7 = pnand %p1214_p6, %p1208_p2 }
 0x17e   : > { %v648_v58 = vmul.f32 %v1599_v11, %v633_v54 }
 0x180   : > { %v761_v56 = vpop.permute.xlu1 %760  ;;  %v658_v57 = vpop.permute.xlu0 %657 }
 0x181   : > { %v664_v33 = vsel %vm663_vm3, %v652_v46, %v658_v57 }
 0x182   : > { %v679_v59 = vmul.f32 %v1607_v12, %v664_v33 }
 0x184   : > { %v682_v61 = vadd.f32 %v679_v59, %v648_v58  ;;  %v587_v62 = vpop.permute.xlu1 %586  ;;  %v692_v63 = vpop.permute.xlu0 %691 }
 0x185   : > { %v698_v1 = vsel %vm697_vm5, %v686_v51, %v692_v63 }
 0x186   : > { %v713_v4 = vmul.f32 %v1634_v16, %v698_v1 }
 0x188   : > { %v716_v5 = vadd.f32 %v713_v4, %v682_v61  ;;  %v795_v6 = vpop.permute.xlu1 %794  ;;  %v736_v7 = vpop.permute.xlu0 %735  ;;  %v548_v4 = vmul.f32 %v1622_v14, %v1575_v3 }
 0x189   : > { %v742_v8 = vsel %vm741_vm6, %v730_v52, %v736_v7 }
 0x18a   : > { %v723_v10 = vmul.f32 %v1719_v2, %v716_v5  ;;  %v757_v22 = vmul.f32 %v1642_v17, %v742_v8 }
 0x18c   : > { %v557_v11 = vpop.permute.xlu1 %556  ;;  %v767_v12 = vpop.permute.xlu0 %766 }
 0x18d   : > { %v565_v16 = vsel %vm564_vm7, %v551_v50, %v557_v11  ;;  %v773_v19 = vsel %vm772_vm8, %v761_v56, %v767_v12 }
 0x18e   : > { %v580_v46 = vmul.f32 %v1533_v23, %v565_v16  ;;  %v788_v47 = vmul.f32 %v1545_v29, %v773_v19  ;;  %v1746_v29 = vrot.slane %v531_v60, %v518_v39 }
 0x190   : > { %v583_v48 = vadd.f32 %v580_v46, %v547_v37  ;;  %v791_v51 = vadd.f32 %v788_v47, %v757_v22  ;;  %v623_v52 = vpop.permute.xlu1 %622  ;;  %v593_v53 = vpop.permute.xlu0 %592 }
 0x191   : > { %v599_v55 = vsel %vm598_vm9, %v587_v62, %v593_v53 }
 0x192   : > { %v614_v13 = vmul.f32 %v1659_v21, %v599_v55 }
 0x194   : > { %v617_v50 = vadd.f32 %v614_v13, %v583_v48  ;;  %v654_v54 = vpop.permute.xlu1 %653  ;;  %v801_v17 = vpop.permute.xlu0 %800 }
 0x195   : > { %v807_v23 = vsel %vm806_vm10, %v795_v6, %v801_v17 }
 0x196   : > { %v726_v56 = vadd.f32 %v723_v10, %v617_v50  ;;  %v822_v57 = vmul.f32 %v1664_v36, %v807_v23 }
 0x198   : > { %v825_v33 = vadd.f32 %v822_v57, %v791_v51  ;;  %v688_v58 = vpop.permute.xlu1 %687  ;;  %v553_v59 = vpop.permute.xlu0 %552 }
 0x19a   : > { %v832_v21 = vmul.f32 %v1746_v29, %v825_v33 }
 0x19c   : > { %v732_v61 = vpop.permute.xlu1 %731  ;;  %v559_v62 = vpop.permute.xlu0 %558  ;;  %v835_v63 = vadd.f32 %v832_v21, %v726_v56 }
 0x19d   : > { %v566_v1 = vsel %vm564_vm7, %v553_v59, %v559_v62 }
 0x19e   : > { %v581_v35 = vmul.f32 %v1628_v15, %v566_v1 }
 0x1a0   : > { %v584_v39 = vadd.f32 %v581_v35, %v548_v4  ;;  %v763_v60 = vpop.permute.xlu1 %762  ;;  %v656_v47 = vpop.permute.xlu0 %655 }
 0x1a4   : > { %v589_v5 = vpop.permute.xlu1 %588  ;;  %v561_v53 = vpop.permute.xlu0 %560 }
 0x1a8   : > { %v797_v36 = vpop.permute.xlu1 %796 }
 0x1ac   : > { %v629_v6 = vpop.permute.xlu1 %628 }
 0x1ad   : > { %v634_v8 = vsel %vm632_vm2, %v629_v6, %v623_v52 }
 0x1ae   : > { %v649_v12 = vmul.f32 %v1674_v40, %v634_v8 }
 0x1b0   : > { %v660_v7 = vpop.permute.xlu1 %659 }
 0x1b1   : > { %v665_v10 = vsel %vm663_vm3, %v654_v54, %v660_v7 }
 0x1b2   : > { %v680_v11 = vmul.f32 %v1535_v24, %v665_v10 }
 0x1b4   : > { %v694_v37 = vpop.permute.xlu1 %693  ;;  %v683_v14 = vadd.f32 %v680_v11, %v649_v12 }
 0x1b5   : > { %v699_v3 = vsel %vm697_vm5, %v688_v58, %v694_v37  ;;  %v696_v58 = vpop.permute.xlu0 %695 }
 0x1b6   : > { %v714_v15 = vmul.f32 %v1539_v26, %v699_v3 }
 0x1b8   : > { %v717_v16 = vadd.f32 %v714_v15, %v683_v14  ;;  %v738_v19 = vpop.permute.xlu1 %737 }
 0x1b9   : > { %v743_v24 = vsel %vm741_vm6, %v732_v61, %v738_v19  ;;  %v549_v61 = vmul.f32 %v1676_v41, %v1581_v9  ;;  %v740_v4 = vpop.permute.xlu0 %739 }
 0x1ba   : > { %v724_v22 = vmul.f32 %v1719_v2, %v717_v16  ;;  %v758_v55 = vmul.f32 %v1647_v18, %v743_v24 }
 0x1bc   : > { %v769_v46 = vpop.permute.xlu1 %768 }
 0x1bd   : > { %v774_v48 = vsel %vm772_vm8, %v763_v60, %v769_v46  ;;  %v771_v6 = vpop.permute.xlu0 %770 }
 0x1be   : > { %v789_v52 = vmul.f32 %v1656_v20, %v774_v48  ;;  %v856_v20 = vadd.f32 %v1690_v45, %v835_v63 }
 0x1c0   : > { %v595_v51 = vpop.permute.xlu1 %594  ;;  %v792_v17 = vadd.f32 %v789_v52, %v758_v55 }
 0x1c1   : > { %v600_v40 = vsel %vm598_vm9, %v589_v5, %v595_v51  ;;  %v597_v8 = vpop.permute.xlu0 %596 }
 0x1c2   : > { %v615_v26 = vmul.f32 %v1549_v31, %v600_v40 }
 0x1c4   : > { %v618_v13 = vadd.f32 %v615_v26, %v584_v39  ;;  %v803_v50 = vpop.permute.xlu1 %802 }
 0x1c5   : > { %v808_v54 = vsel %vm806_vm10, %v797_v36, %v803_v50  ;;  %v805_v19 = vpop.permute.xlu0 %804 }
 0x1c6   : > { %v727_v23 = vadd.f32 %v724_v22, %v618_v13  ;;  %v823_v56 = vmul.f32 %v1668_v38, %v808_v54  ;;  %v859_v38 = vmax.f32 %v856_v20, 0.0 }
 0x1c8   : > { %v826_v57 = vadd.f32 %v823_v56, %v792_v17  ;;  %v625_v33 = vpop.permute.xlu1 %624  ;;  %v862_v5 = vmin.f32 %v859_v38, 6.0 }
 0x1ca   : > { %v833_v59 = vmul.f32 %v1746_v29, %v826_v57 }
 0x1cc   : > { %v555_v31 = vpop.permute.xlu1 %554  ;;  %v836_v21 = vadd.f32 %v833_v59, %v727_v23 }
 0x1cd   : > { %v567_v18 = vsel %vm564_vm7, %v555_v31, %v561_v53 }
 0x1ce   : > { %v582_v62 = vmul.f32 %v1680_v42, %v567_v18  ;;  %v857_v1 = vadd.f32 %v1688_v44, %v836_v21 }
 0x1d0   : > { %v585_v35 = vadd.f32 %v582_v62, %v549_v61  ;;  %v690_v39 = vpop.permute.xlu1 %689  ;;  %v860_v60 = vmax.f32 %v857_v1, 0.0 }
 0x1d2   : > { %v863_v36 = vmin.f32 %v860_v60, 6.0 }
 0x1d4   : > { %v734_v45 = vpop.permute.xlu1 %733  ;;  %v1091_v63 = vpack.c.bf16 %v863_v36, %v862_v5 }
 0x1d5   : > { %v744_v3 = vsel %vm741_vm6, %v734_v45, %v740_v4 }
 0x1d6   : > { %1092 = vmatpush3.bf16.msra.mxu1 %v1091_v63  ;;  %v759_v46 = vmul.f32 %v1543_v28, %v744_v3 }
 0x1d7   : > { %1085 = vmatprep.subr.mxu1 %v1301_v0  ;;  %v700_v0 = vsel %vm697_vm5, %v690_v39, %v696_v58 }
 0x1d8   : > { %v765_v7 = vpop.permute.xlu1 %764  ;;  %v715_v22 = vmul.f32 %v1541_v27, %v700_v0 }
 0x1d9   : > { %v775_v11 = vsel %vm772_vm8, %v765_v7, %v771_v6 }
 0x1dc   : > { %v591_v9 = vpop.permute.xlu1 %590 }
 0x1dd   : > { %v601_v41 = vsel %vm598_vm9, %v591_v9, %v597_v8 }
 0x1de   : > { %v616_v42 = vmul.f32 %v1551_v32, %v601_v41  ;;  %v790_v32 = vmul.f32 %v1547_v30, %v775_v11 }
 0x1e0   : > { %v619_v44 = vadd.f32 %v616_v42, %v585_v35  ;;  %v631_v10 = vpop.permute.xlu1 %630  ;;  %v793_v40 = vadd.f32 %v790_v32, %v759_v46 }
 0x1e1   : > { %v635_v12 = vsel %vm632_vm2, %v631_v10, %v625_v33 }
 0x1e2   : > { %v650_v15 = vmul.f32 %v1682_v43, %v635_v12 }
 0x1e4   : > { %v662_v37 = vpop.permute.xlu1 %661 }
 0x1e5   : > { %v666_v14 = vsel %vm663_vm3, %v656_v47, %v662_v37 }
 0x1e6   : > { %v681_v16 = vmul.f32 %v1537_v25, %v666_v14 }
 0x1e8   : > { %v684_v48 = vadd.f32 %v681_v16, %v650_v15  ;;  %v799_v51 = vpop.permute.xlu1 %798 }
 0x1e9   : > { %v809_v24 = vsel %vm806_vm10, %v799_v51, %v805_v19 }
 0x1ea   : > { %v718_v52 = vadd.f32 %v715_v22, %v684_v48  ;;  %v824_v47 = vmul.f32 %v1553_v34, %v809_v24  ;;  %v870_v34 = vpop.permute.xlu0 %869 }
 0x1ec   : > { %v827_v30 = vadd.f32 %v824_v47, %v793_v40  ;;  %v725_v25 = vmul.f32 %v1719_v2, %v718_v52 }
 0x1ee   : > { %v728_v43 = vadd.f32 %v725_v25, %v619_v44  ;;  %v834_v27 = vmul.f32 %v1746_v29, %v827_v30 }
 0x1f0   : > { %v837_v26 = vadd.f32 %v834_v27, %v728_v43 }
 0x1f9   : > { %v854_v28 = vpop.permute.xlu1 %853 }
 0x1fa   : > { %v858_v53 = vadd.f32 %v854_v28, %v837_v26 }
 0x1fc   : > { %v861_v55 = vmax.f32 %v858_v53, 0.0 }
 0x1fe   : > { %v864_v13 = vmin.f32 %v861_v55, 6.0 }
 0x200   : > { %1086 = vmatpush3.msra.mxu1 %v864_v13 }
 0x201   : > { %1088 = vmatmul.mubr.msk.f32.vlgmr.msra.gmra.mrb[0].mxu1 %vm872_vm11, %v865_v49 }
 0x2d4   : > { %v942_v2 = vpop.f32.mrb[0].mxu1 }
 0x2d5   : > { %v943_v29 = vadd.f32 %v942_v2, %v870_v34  ;;  %v1089_v50 = vpop.f32.mrb[1].mxu1 }
 0x2d7   : > { %946 = vst [vmem:[%s362_s19] sm:$0xff] %v943_v29 }
 0x2d8   : > { %1218 = shalt.err (!%p1215_p7)
}
 0x2d9   : > { %s1219_s26 = scalar_lea.hbm %s1818_s24, 128  ;;  %s1223_s15 = scalar_lea.hbm %s1880_s9, 512 }
 0x2da   : > { %p1220_p9 = scmp.ne.s32.totalorder %s1818_s24, %s1219_s26  ;;  %p1224_p12 = scmp.lt.u32.totalorder %s1818_s24, %s1880_s9 }
 0x2db   : > { %p1225_p13 = scmp.lt.u32.totalorder %s1223_s15, %s1219_s26  ;;  %p1227_p1 = scmp.lt.u32.totalorder %s1219_s26, %s1818_s24 }
 0x2dc   : > { %p1221_p10 = pnand %p1220_p9, %p1423_p3 }
 0x2dd   : > { %p1226_p0 = por %p1225_p13, %p1224_p12 }
 0x2de   : > { %p1222_p11 = pneg %p1221_p10 }
 0x2df   : > { %p1228_p2 = por %p1227_p1, %p1226_p0 }
 0x2e1   : > { %p1229_p4 = pnand %p1228_p2, %p1222_p11 }
 0x2e3   : > { %1232 = shalt.err (!%p1229_p4)
}
 0x2e4   : > { %1093 = dma.vmem_to_hbm [thread:$0]  (%p1423_p3), %s1820_s28, 128, %s1818_s24, %s948_s13  }
 0x2e5 PF: > { %p1099_p5 = scmp.ge.s32.totalorder %s1299_s16, 2  ;;  %s975_s18 = sand.u32 1, %s1271_s30  }
 0x2e6   : > { %s976_s12 = scalar_lea.sflag [#allocation3], %s975_s18 }
 0x2e7   : > { %p1096_p6 = pnand %p1099_p5, %p1432_p8 }
 0x2e9   : > { %1266 = dma.done.wait (!%p1096_p6), %s976_s12, 128  }
 0x2ea   : > { %1268 = vsyncadd (!%p1096_p6), %s976_s12, 4294967168  ;;  %s22_s16 = sadd.s32 1, %s1299_s16   ;;  %s1891_s12 = sld [smem:[#allocation5_spill]] }
 0x2eb   : > { %p19_p7 = scmp.ge.s32.totalorder %s22_s16, 6   ;;  %s1892_s13 = sld [smem:[#allocation6_spill]] }
 0x2ec   : > { %s1893_s14 = sld [smem:[#allocation7_spill]]  ;;  %s1894_s15 = sld [smem:[#allocation8_spill]] }
 0x2ed   : > { %s1895_s30 = smov %s1275_s10  ;;  %s1896_s10 = smov %s1279_s11 }
 0x2ee   : > { %s1897_s11 = smov %s1441_s27  ;;  %21 = sbr.rel (!%p19_p7) target bundleno = 5 (0x5), region = 94 }
 0x2f5   :  { %981 = vsyncpa [#allocation3], 1 }
 0x2f6   :  { %983 = vsyncpa [#allocation3 + $0x1], 1 }

</bundles_post_ra>
